<compile_context>
chip_gen: v7x
topology: tpu7x:2x2x1
jax: 0.10.0
libtpu: 0.0.40
codegen_flags: <defaults>
</compile_context>

<pallas_src>
import functools

import jax
import jax.numpy as jnp
from jax.experimental import pallas as pl
from jax.experimental.pallas import tpu as pltpu

_LANE = 512                    # lane-dense slab width (multiple of 128 lanes)
_UNROLL_CLASS_LIMIT = 128      # fully unroll compare/select sweep up to here
_FORI_UNROLL = 8               # unroll factor for very large class tables
_TARGET_TILE_BYTES = 2 << 20   # ~2 MiB per in/out block -> ~8 MiB double-buffered
                               # (safe on v5e's 16 MiB scoped VMEM; near roofline
                               # on v6e/v7x)


def _round_up(x, m):
    return (x + m - 1) // m * m


def _pick_tile_rows(rows, row_bytes):
    """Rows per block: ~_TARGET_TILE_BYTES per buffer, >=2 grid steps if possible."""
    by_vmem = max(1, _TARGET_TILE_BYTES // row_bytes)
    by_split = pl.cdiv(rows, 2)        # keep both v7x TensorCores busy
    tile = min(by_vmem, by_split, rows)
    return _round_up(max(tile, 1), 8)


def _map_label_kernel(mapping_ref, label_ref, out_ref, *, num_classes, wrap_negative):
    """out[r, c] = mapping[label[r, c]].

    mapping_ref : SMEM ref (scalar prefetch), shape (num_classes,), int32
    label_ref   : VMEM ref, (TILE_R, LANE) or (TILE_H, W) int tile
    out_ref     : VMEM ref, same tile shape, output dtype
    """
    lbl = label_ref[...]
    if wrap_negative:
        # numpy fancy indexing wraps negatives: mapping[K + v].
        lbl = jnp.where(lbl < 0, lbl + num_classes, lbl)

    out_dtype = out_ref.dtype
    # Initialize with the k == 0 value: saves one compare+select per class.
    out = jnp.full(lbl.shape, mapping_ref[0].astype(out_dtype), dtype=out_dtype)

    if num_classes <= _UNROLL_CLASS_LIMIT:
        # Static, fully unrolled VPU compare+select sweep.
        for k in range(1, num_classes):
            out = jnp.where(lbl == k, mapping_ref[k].astype(out_dtype), out)
    else:
        # Very large class counts: unrolled fori_loop keeps the 4 VALU slots
        # full without ballooning code size.
        def body(k, acc):
            return jnp.where(lbl == k, mapping_ref[k].astype(out_dtype), acc)

        out = jax.lax.fori_loop(1, num_classes, body, out, unroll=_FORI_UNROLL)

    out_ref[...] = out


def map_label(image, label, mapping, out_dtype=None):
    """Pallas equivalent of MapLabel.forward(image, label)."""
    num_classes = int(mapping.shape[0])
    if out_dtype is None:
        out_dtype = mapping.dtype       # faithful to numpy `mapping[label]` dtype
    H, W = label.shape
    itembytes = max(jnp.dtype(label.dtype).itemsize, jnp.dtype(out_dtype).itemsize)
    wrap_negative = bool(jnp.issubdtype(label.dtype, jnp.signedinteger))

    # SMEM scalar table is 32-bit.
    mapping_i32 = mapping.astype(jnp.int32)

    kernel = functools.partial(
        _map_label_kernel, num_classes=num_classes, wrap_negative=wrap_negative)
    compiler_params = pltpu.CompilerParams(dimension_semantics=("parallel",))

    # ---- Path A: W already lane-aligned -> tile (H, W) directly -------------
    if W % 128 == 0 and W * 8 * itembytes <= (4 << 20):
        tile_h = _pick_tile_rows(H, W * itembytes)
        mapped = pl.pallas_call(
            kernel,
            out_shape=jax.ShapeDtypeStruct((H, W), out_dtype),
            grid_spec=pltpu.PrefetchScalarGridSpec(
                num_scalar_prefetch=1,
                grid=(pl.cdiv(H, tile_h),),
                in_specs=[pl.BlockSpec((tile_h, W), lambda i, m: (i, 0))],
                out_specs=pl.BlockSpec((tile_h, W), lambda i, m: (i, 0)),
            ),
            compiler_params=compiler_params,
        )(mapping_i32, label)
        return image, mapped

    # ---- Path B: generic lane-dense slab (rows, _LANE) ----------------------
    total = H * W
    rows = pl.cdiv(total, _LANE)
    padded_total = rows * _LANE                 # pad <= 511 elements only
    label_flat = label.reshape(-1)
    if padded_total != total:
        label_flat = jnp.pad(label_flat, (0, padded_total - total))
    label_slab = label_flat.reshape(rows, _LANE)

    tile_r = _pick_tile_rows(rows, _LANE * itembytes)
    mapped_slab = pl.pallas_call(
        kernel,
        out_shape=jax.ShapeDtypeStruct((rows, _LANE), out_dtype),
        grid_spec=pltpu.PrefetchScalarGridSpec(
            num_scalar_prefetch=1,
            grid=(pl.cdiv(rows, tile_r),),      # ragged last block masked by Pallas
            in_specs=[pl.BlockSpec((tile_r, _LANE), lambda i, m: (i, 0))],
            out_specs=pl.BlockSpec((tile_r, _LANE), lambda i, m: (i, 0)),
        ),
        compiler_params=compiler_params,
    )(mapping_i32, label_slab)

    mapped_flat = mapped_slab.reshape(-1)
    if padded_total != total:
        mapped_flat = mapped_flat[:total]
    mapped = mapped_flat.reshape(H, W)

    # Image is returned untouched, exactly like the PyTorch module.
    return image, mapped


if __name__ == "__main__":
    key = jax.random.PRNGKey(0)
    k_img, k_lbl, k_lbl2, k_lbl3 = jax.random.split(key, 4)

    # --- small-K test: unrolled sweep, generic slab path (W=16 not /128) -----
    num_classes = 8
    mapping = jnp.array([3, 0, 7, 1, 5, 2, 6, 4], dtype=jnp.int32)
    image = jax.random.normal(k_img, (2, 4, 16, 16), dtype=jnp.float32)
    label = jax.random.randint(k_lbl, (16, 16), 0, num_classes, dtype=jnp.int32)

    out_image, out_label = map_label(image, label, mapping)
    jax.block_until_ready((out_image, out_label))
    ref_label = mapping[label]
    assert out_label.dtype == ref_label.dtype
    assert out_label.shape == ref_label.shape
    assert bool(jnp.all(out_label == ref_label))
    assert bool(jnp.all(out_image == image))

    # --- lane-aligned path: W % 128 == 0 -> direct (H, W) tiling -------------
    label2 = jax.random.randint(k_lbl2, (16, 128), 0, num_classes, dtype=jnp.int32)
    _, out_label2 = map_label(image, label2, mapping)
    jax.block_until_ready(out_label2)
    assert bool(jnp.all(out_label2 == mapping[label2]))

    # --- large-K path: exercises the unrolled fori_loop sweep ----------------
    num_classes3 = 150
    mapping3 = jnp.flip(jnp.arange(num_classes3, dtype=jnp.int32))
    label3 = jax.random.randint(k_lbl3, (16, 16), 0, num_classes3, dtype=jnp.int32)
    _, out_label3 = map_label(image, label3, mapping3)
    jax.block_until_ready(out_label3)
    assert bool(jnp.all(out_label3 == mapping3[label3]))

    print("KERNEL_OK")
</pallas_src>

<mosaic_0001>
module attributes {stable_mosaic.version = 11 : i64} {
  func.func @_map_label_kernel(%arg0: i32, %arg1: memref<8xi32, #tpu.memory_space<smem>>, %arg2: memref<8x512xi32, #tpu.memory_space<vmem>>, %arg3: memref<8x512xi32, #tpu.memory_space<vmem>>) attributes {dimension_semantics = [#tpu.dimension_semantics<parallel>], iteration_bounds = array<i64: 1>, scalar_prefetch = 1 : i64, scratch_operands = 0 : i64, tpu.core_type = #tpu.core_type<tc>, window_params = [{transform_indices = @transform_0, window_bounds = array<i64: 8, 512>}, {transform_indices = @transform_1, window_bounds = array<i64: 8, 512>}]} {
    %c0 = arith.constant 0 : index
    %c0_0 = arith.constant 0 : index
    %0 = vector.load %arg2[%c0, %c0_0] : memref<8x512xi32, #tpu.memory_space<vmem>>, vector<8x512xi32>
    %c0_i32 = arith.constant 0 : i32
    %1 = vector.broadcast %c0_i32 : i32 to vector<8x512xi32>
    %2 = arith.cmpi slt, %0, %1 : vector<8x512xi32>
    %c8_i32 = arith.constant 8 : i32
    %3 = vector.broadcast %c8_i32 : i32 to vector<8x512xi32>
    %4 = arith.addi %0, %3 : vector<8x512xi32>
    %5 = arith.select %2, %4, %0 : vector<8x512xi1>, vector<8x512xi32>
    %c0_1 = arith.constant 0 : index
    %6 = memref.load %arg1[%c0_1] : memref<8xi32, #tpu.memory_space<smem>>
    %7 = vector.broadcast %6 : i32 to vector<8x512xi32>
    %c1_i32 = arith.constant 1 : i32
    %8 = vector.broadcast %c1_i32 : i32 to vector<8x512xi32>
    %9 = arith.cmpi eq, %5, %8 : vector<8x512xi32>
    %c1 = arith.constant 1 : index
    %10 = memref.load %arg1[%c1] : memref<8xi32, #tpu.memory_space<smem>>
    %11 = vector.broadcast %10 : i32 to vector<8x512xi32>
    %12 = arith.select %9, %11, %7 : vector<8x512xi1>, vector<8x512xi32>
    %c2_i32 = arith.constant 2 : i32
    %13 = vector.broadcast %c2_i32 : i32 to vector<8x512xi32>
    %14 = arith.cmpi eq, %5, %13 : vector<8x512xi32>
    %c2 = arith.constant 2 : index
    %15 = memref.load %arg1[%c2] : memref<8xi32, #tpu.memory_space<smem>>
    %16 = vector.broadcast %15 : i32 to vector<8x512xi32>
    %17 = arith.select %14, %16, %12 : vector<8x512xi1>, vector<8x512xi32>
    %c3_i32 = arith.constant 3 : i32
    %18 = vector.broadcast %c3_i32 : i32 to vector<8x512xi32>
    %19 = arith.cmpi eq, %5, %18 : vector<8x512xi32>
    %c3 = arith.constant 3 : index
    %20 = memref.load %arg1[%c3] : memref<8xi32, #tpu.memory_space<smem>>
    %21 = vector.broadcast %20 : i32 to vector<8x512xi32>
    %22 = arith.select %19, %21, %17 : vector<8x512xi1>, vector<8x512xi32>
    %c4_i32 = arith.constant 4 : i32
    %23 = vector.broadcast %c4_i32 : i32 to vector<8x512xi32>
    %24 = arith.cmpi eq, %5, %23 : vector<8x512xi32>
    %c4 = arith.constant 4 : index
    %25 = memref.load %arg1[%c4] : memref<8xi32, #tpu.memory_space<smem>>
    %26 = vector.broadcast %25 : i32 to vector<8x512xi32>
    %27 = arith.select %24, %26, %22 : vector<8x512xi1>, vector<8x512xi32>
    %c5_i32 = arith.constant 5 : i32
    %28 = vector.broadcast %c5_i32 : i32 to vector<8x512xi32>
    %29 = arith.cmpi eq, %5, %28 : vector<8x512xi32>
    %c5 = arith.constant 5 : index
    %30 = memref.load %arg1[%c5] : memref<8xi32, #tpu.memory_space<smem>>
    %31 = vector.broadcast %30 : i32 to vector<8x512xi32>
    %32 = arith.select %29, %31, %27 : vector<8x512xi1>, vector<8x512xi32>
    %c6_i32 = arith.constant 6 : i32
    %33 = vector.broadcast %c6_i32 : i32 to vector<8x512xi32>
    %34 = arith.cmpi eq, %5, %33 : vector<8x512xi32>
    %c6 = arith.constant 6 : index
    %35 = memref.load %arg1[%c6] : memref<8xi32, #tpu.memory_space<smem>>
    %36 = vector.broadcast %35 : i32 to vector<8x512xi32>
    %37 = arith.select %34, %36, %32 : vector<8x512xi1>, vector<8x512xi32>
    %c7_i32 = arith.constant 7 : i32
    %38 = vector.broadcast %c7_i32 : i32 to vector<8x512xi32>
    %39 = arith.cmpi eq, %5, %38 : vector<8x512xi32>
    %c7 = arith.constant 7 : index
    %40 = memref.load %arg1[%c7] : memref<8xi32, #tpu.memory_space<smem>>
    %41 = vector.broadcast %40 : i32 to vector<8x512xi32>
    %42 = arith.select %39, %41, %37 : vector<8x512xi1>, vector<8x512xi32>
    %c0_2 = arith.constant 0 : index
    %c0_3 = arith.constant 0 : index
    %43 = vector.load %arg3[%c0_2, %c0_3] : memref<8x512xi32, #tpu.memory_space<vmem>>, vector<8x512xi32>
    tpu.vector_store %arg3[%c0_2, %c0_3], %42 {strides = array<i32>} : memref<8x512xi32, #tpu.memory_space<vmem>>, vector<8x512xi32>,
    return
  }
  func.func @transform_0(%arg0: i32, %arg1: memref<8xi32, #tpu.memory_space<smem>>) -> (i32, i32) {
    %c0_i32 = arith.constant 0 : i32
    %c0_i32_0 = arith.constant 0 : i32
    return %arg0, %c0_i32 : i32, i32
  }
  func.func @transform_1(%arg0: i32, %arg1: memref<8xi32, #tpu.memory_space<smem>>) -> (i32, i32) {
    %c0_i32 = arith.constant 0 : i32
    %c0_i32_0 = arith.constant 0 : i32
    return %arg0, %c0_i32 : i32, i32
  }
}

</mosaic_0001>

<bundles_post_ra>
// kernel: tpu_custom_call.1
= control target key start
LH: loop header
LB: loop body
LE: loop exit
PB: predicated region body
PF: predicated region fallthrough
CT: control target
= control target key end

     0   :  { %s467_s0 = inlined_call_operand.hbm [shape: s32[8], index: 0, kind: input, shape index: {}]   ;;  %s468_s1 = inlined_call_operand.hbm [shape: s32[1,512], index: 1, kind: input, shape index: {}]   ;;  %s469_s2 = inlined_call_operand.hbm [shape: s32[1,512], index: 2, kind: output, shape index: {}]  }
   0x1   :  { %s229_s11 = scalar_lea.hbm %s467_s0, 16 }
   0x2   :  { %p230_p0 = scmp.ne.s32.totalorder %s467_s0, %s229_s11  ;;  %p233_p1 = scmp.lt.u32.totalorder %s229_s11, %s467_s0 }
   0x4   :  { %p235_p2 = pnand %p233_p1, %p230_p0 }
   0x6   :  { %238 = shalt.err (!%p235_p2)  }
   0x7   :  { %s289_s16 = smov [#allocation3]  }
   0x8   :  { %8 = dma.hbm_to_smem %s467_s0, 16, %s289_s16, [#allocation2] }
   0x9   :  { %283 = dma.done.wait [#allocation2], 16 }
   0xa   :  { %284 = vsyncadd [#allocation2], 4294967280 }
   0xb   :  { %10 = sfence }
   0xc   :  { %11 = vsyncpa [#allocation5], 0 }
   0xd   :  { %12 = vsyncpa [#allocation6], 0 }
   0xe   :  { %17 = vsyncadd [#allocation5], 448  ;;  %s290_s19 = smov [#allocation4]   ;;  %s239_s23 = scalar_lea.hbm %s468_s1, 64 }
   0xf   :  { %s18_s20 = sshll.u32 %s290_s19, 4  ;;  %p240_p3 = scmp.ne.s32.totalorder %s468_s1, %s239_s23  ;;  %s19_s20 = int_to_ptr.vmem [resolvable:$true] %s18_s20 }
  0x10   :  { %p243_p4 = scmp.lt.u32.totalorder %s239_s23, %s468_s1 }
  0x12   :  { %p245_p5 = pnand %p243_p4, %p240_p3 }
  0x14   :  { %248 = shalt.err (!%p245_p5)
}
  0x15   :  { %s249_s0 = scalar_lea.vmem %s19_s20, 64  ;;  %s253_s28 = scalar_lea.vmem %s19_s20, 512 }
  0x16   :  { %p250_p6 = scmp.ne.s32.totalorder %s19_s20, %s249_s0  ;;  %p254_p7 = scmp.lt.s32.totalorder %s19_s20, %s19_s20 }
  0x17   :  { %p255_p8 = scmp.lt.s32.totalorder %s253_s28, %s249_s0 }
  0x19   :  { %p256_p9 = por %p255_p8, %p254_p7 }
  0x1b   :  { %p257_p10 = pnand %p256_p9, %p250_p6 }
  0x1d   :  { %260 = shalt.err (!%p257_p10)
}
  0x1e   :  { %s291_s29 = smov 64   ;;  %s292_s30 = smov 4  }
  0x1f   :  { %24 = dma.hbm_to_vmem [thread:$0]  %s468_s1, 64, %s19_s20, [#allocation5], %s291_s29, %s291_s29, %s292_s30  }
  0x20   :  { %285 = dma.done.wait [#allocation5], 512  }
  0x21   :  { %286 = vsyncadd [#allocation5], 4294966784  ;;  %s60_s5 = sld [smem:[#allocation3]]  ;;  %s217_s6 = sld [smem:[#allocation3 + $0x1]]  ;;  %v188_v0 = vlaneseq  ;;  %v28_v1 = vld [vmem:[#allocation4] sm:$0xf] }
  0x22   :  { %s218_s7 = sld [smem:[#allocation3 + $0x2]]  ;;  %s219_s8 = sld [smem:[#allocation3 + $0x3]]  ;;  %v29_v4 = vld [vmem:[#allocation4 + $0x4] sm:$0xf]  ;;  %v30_v5 = vld [vmem:[#allocation4 + $0x8] sm:$0xf] }
  0x23   :  { %s220_s9 = sld [smem:[#allocation3 + $0x4]]  ;;  %s221_s10 = sld [smem:[#allocation3 + $0x5]]  ;;  %vm36_vm0 = vcmp.lt.s32.totalorder %v28_v1, 0  ;;  %v44_v6 = vadd.s32 8, %v28_v1  ;;  %vm344_vm1 = vcmp.lt.s32.totalorder %v188_v0, 512  ;;  %vm37_vm2 = vcmp.lt.s32.totalorder %v29_v4, 0 }
  0x24   :  { %s222_s11 = sld [smem:[#allocation3 + $0x6]]  ;;  %s223_s12 = sld [smem:[#allocation3 + $0x7]]  ;;  %v45_v12 = vadd.s32 8, %v29_v4  ;;  %vm38_vm3 = vcmp.lt.s32.totalorder %v30_v5, 0  ;;  %v31_v16 = vld [vmem:[#allocation4 + $0xc] sm:$0xf] }
  0x25   :  { %v52_v13 = vsel %vm36_vm0, %v44_v6, %v28_v1  ;;  %v46_v20 = vadd.s32 8, %v30_v5  ;;  %vm39_vm11 = vcmp.lt.s32.totalorder %v31_v16, 0  ;;  %v47_v29 = vadd.s32 8, %v31_v16  ;;  %v32_v40 = vld [vmem:[#allocation4 + $0x10] sm:$0xf] }
  0x26   :  { %vm62_vm4 = vcmp.eq.s32.totalorder %v52_v13, 1  ;;  %vm80_vm5 = vcmp.eq.s32.totalorder %v52_v13, 2  ;;  %vm98_vm6 = vcmp.eq.s32.totalorder %v52_v13, 3  ;;  %vm116_vm7 = vcmp.eq.s32.totalorder %v52_v13, 4  ;;  %v33_v43 = vld [vmem:[#allocation4 + $0x14] sm:$0xf] }
  0x27   :  { %v336_v2 = vstv %s60_s5  ;;  %v338_v3 = vstv %s217_s6  ;;  %vm134_vm8 = vcmp.eq.s32.totalorder %v52_v13, 5  ;;  %vm152_vm9 = vcmp.eq.s32.totalorder %v52_v13, 6  ;;  %v34_v44 = vld [vmem:[#allocation4 + $0x18] sm:$0xf]  ;;  %v35_v47 = vld [vmem:[#allocation4 + $0x1c] sm:$0xf] }
  0x28   :  { %v340_v7 = vstv %s218_s7  ;;  %v342_v8 = vstv %s219_s8  ;;  %v72_v17 = vsel %vm62_vm4, %v338_v3, %v336_v2  ;;  %vm170_vm10 = vcmp.eq.s32.totalorder %v52_v13, 7 }
  0x29   :  { %v348_v10 = vstv %s220_s9  ;;  %v350_v11 = vstv %s221_s10  ;;  %v90_v18 = vsel %vm80_vm5, %v340_v7, %v72_v17  ;;  %v53_v19 = vsel %vm37_vm2, %v45_v12, %v29_v4 }
  0x2a   :  { %v352_v14 = vstv %s222_s11  ;;  %v354_v15 = vstv %s223_s12  ;;  %v108_v21 = vsel %vm98_vm6, %v342_v8, %v90_v18  ;;  %vm63_vm12 = vcmp.eq.s32.totalorder %v53_v19, 1 }
  0x2b   :  { %vm81_vm13 = vcmp.eq.s32.totalorder %v53_v19, 2  ;;  %vm99_vm14 = vcmp.eq.s32.totalorder %v53_v19, 3  ;;  %v126_v22 = vsel %vm116_vm7, %v348_v10, %v108_v21  ;;  %v73_v23 = vsel %vm63_vm12, %v338_v3, %v336_v2 }
  0x2c   :  { %vm117_vm15 = vcmp.eq.s32.totalorder %v53_v19, 4  ;;  %vm135_vm0 = vcmp.eq.s32.totalorder %v53_v19, 5  ;;  %v144_v24 = vsel %vm134_vm8, %v350_v11, %v126_v22  ;;  %v91_v25 = vsel %vm81_vm13, %v340_v7, %v73_v23 }
  0x2d   :  { %vm153_vm4 = vcmp.eq.s32.totalorder %v53_v19, 6  ;;  %vm171_vm2 = vcmp.eq.s32.totalorder %v53_v19, 7  ;;  %v162_v26 = vsel %vm152_vm9, %v352_v14, %v144_v24  ;;  %v109_v27 = vsel %vm99_vm14, %v342_v8, %v91_v25 }
  0x2e   :  { %v54_v28 = vsel %vm38_vm3, %v46_v20, %v30_v5  ;;  %v180_v30 = vsel %vm170_vm10, %v354_v15, %v162_v26  ;;  %v127_v31 = vsel %vm117_vm15, %v348_v10, %v109_v27  ;;  %v55_v38 = vsel %vm39_vm11, %v47_v29, %v31_v16 }
  0x2f   :  { %vm64_vm5 = vcmp.eq.s32.totalorder %v54_v28, 1  ;;  %vm82_vm6 = vcmp.eq.s32.totalorder %v54_v28, 2  ;;  %192 = vst.msk [vmem:[#allocation7] sm:$0xf] %vm344_vm1, %v180_v30  ;;  %v145_v32 = vsel %vm135_vm0, %v350_v11, %v127_v31  ;;  %vm100_vm7 = vcmp.eq.s32.totalorder %v54_v28, 3 }
  0x30   :  { %v74_v33 = vsel %vm64_vm5, %v338_v3, %v336_v2  ;;  %vm118_vm8 = vcmp.eq.s32.totalorder %v54_v28, 4  ;;  %v163_v34 = vsel %vm153_vm4, %v352_v14, %v145_v32  ;;  %vm136_vm3 = vcmp.eq.s32.totalorder %v54_v28, 5 }
  0x31   :  { %v92_v35 = vsel %vm82_vm6, %v340_v7, %v74_v33  ;;  %vm154_vm9 = vcmp.eq.s32.totalorder %v54_v28, 6  ;;  %v181_v36 = vsel %vm171_vm2, %v354_v15, %v163_v34  ;;  %vm172_vm10 = vcmp.eq.s32.totalorder %v54_v28, 7 }
  0x32   :  { %v110_v37 = vsel %vm100_vm7, %v342_v8, %v92_v35  ;;  %193 = vst.msk [vmem:[#allocation7 + $0x4] sm:$0xf] %vm344_vm1, %v181_v36  ;;  %vm65_vm12 = vcmp.eq.s32.totalorder %v55_v38, 1  ;;  %vm83_vm13 = vcmp.eq.s32.totalorder %v55_v38, 2  ;;  %vm101_vm14 = vcmp.eq.s32.totalorder %v55_v38, 3 }
  0x33   :  { %v128_v39 = vsel %vm118_vm8, %v348_v10, %v110_v37  ;;  %v75_v42 = vsel %vm65_vm12, %v338_v3, %v336_v2  ;;  %vm119_vm15 = vcmp.eq.s32.totalorder %v55_v38, 4  ;;  %vm137_vm0 = vcmp.eq.s32.totalorder %v55_v38, 5 }
  0x34   :  { %v146_v41 = vsel %vm136_vm3, %v350_v11, %v128_v39  ;;  %v93_v46 = vsel %vm83_vm13, %v340_v7, %v75_v42  ;;  %vm155_vm11 = vcmp.eq.s32.totalorder %v55_v38, 6  ;;  %vm173_vm4 = vcmp.eq.s32.totalorder %v55_v38, 7 }
  0x35   :  { %v164_v45 = vsel %vm154_vm9, %v352_v14, %v146_v41  ;;  %v111_v49 = vsel %vm101_vm14, %v342_v8, %v93_v46  ;;  %vm40_vm2 = vcmp.lt.s32.totalorder %v32_v40, 0  ;;  %v48_v50 = vadd.s32 8, %v32_v40 }
  0x36   :  { %v182_v48 = vsel %vm172_vm10, %v354_v15, %v164_v45  ;;  %v129_v51 = vsel %vm119_vm15, %v348_v10, %v111_v49  ;;  %vm41_vm5 = vcmp.lt.s32.totalorder %v33_v43, 0  ;;  %v49_v52 = vadd.s32 8, %v33_v43 }
  0x37   :  { %194 = vst.msk [vmem:[#allocation7 + $0x8] sm:$0xf] %vm344_vm1, %v182_v48  ;;  %vm42_vm6 = vcmp.lt.s32.totalorder %v34_v44, 0  ;;  %v147_v53 = vsel %vm137_vm0, %v350_v11, %v129_v51  ;;  %v56_v54 = vsel %vm40_vm2, %v48_v50, %v32_v40  ;;  %v50_v55 = vadd.s32 8, %v34_v44 }
  0x38   :  { %vm43_vm7 = vcmp.lt.s32.totalorder %v35_v47, 0  ;;  %v165_v56 = vsel %vm155_vm11, %v352_v14, %v147_v53  ;;  %vm66_vm8 = vcmp.eq.s32.totalorder %v56_v54, 1  ;;  %vm84_vm3 = vcmp.eq.s32.totalorder %v56_v54, 2 }
  0x39   :  { %vm102_vm9 = vcmp.eq.s32.totalorder %v56_v54, 3  ;;  %v183_v57 = vsel %vm173_vm4, %v354_v15, %v165_v56  ;;  %v76_v58 = vsel %vm66_vm8, %v338_v3, %v336_v2  ;;  %vm120_vm10 = vcmp.eq.s32.totalorder %v56_v54, 4 }
  0x3a   :  { %vm138_vm12 = vcmp.eq.s32.totalorder %v56_v54, 5  ;;  %195 = vst.msk [vmem:[#allocation7 + $0xc] sm:$0xf] %vm344_vm1, %v183_v57  ;;  %v94_v59 = vsel %vm84_vm3, %v340_v7, %v76_v58  ;;  %vm156_vm13 = vcmp.eq.s32.totalorder %v56_v54, 6  ;;  %vm174_vm14 = vcmp.eq.s32.totalorder %v56_v54, 7 }
  0x3b   :  { %v57_v60 = vsel %vm41_vm5, %v49_v52, %v33_v43  ;;  %v112_v61 = vsel %vm102_vm9, %v342_v8, %v94_v59  ;;  %v58_v6 = vsel %vm42_vm6, %v50_v55, %v34_v44  ;;  %v51_v12 = vadd.s32 8, %v35_v47 }
  0x3c   :  { %vm67_vm15 = vcmp.eq.s32.totalorder %v57_v60, 1  ;;  %vm85_vm0 = vcmp.eq.s32.totalorder %v57_v60, 2  ;;  %vm103_vm11 = vcmp.eq.s32.totalorder %v57_v60, 3  ;;  %v130_v62 = vsel %vm120_vm10, %v348_v10, %v112_v61 }
  0x3d   :  { %v77_v63 = vsel %vm67_vm15, %v338_v3, %v336_v2  ;;  %vm121_vm4 = vcmp.eq.s32.totalorder %v57_v60, 4  ;;  %vm139_vm2 = vcmp.eq.s32.totalorder %v57_v60, 5  ;;  %v148_v0 = vsel %vm138_vm12, %v350_v11, %v130_v62 }
  0x3e   :  { %v95_v1 = vsel %vm85_vm0, %v340_v7, %v77_v63  ;;  %vm157_vm8 = vcmp.eq.s32.totalorder %v57_v60, 6  ;;  %vm175_vm3 = vcmp.eq.s32.totalorder %v57_v60, 7  ;;  %v166_v4 = vsel %vm156_vm13, %v352_v14, %v148_v0 }
  0x3f   :  { %v113_v5 = vsel %vm103_vm11, %v342_v8, %v95_v1  ;;  %v184_v13 = vsel %vm174_vm14, %v354_v15, %v166_v4  ;;  %vm68_vm5 = vcmp.eq.s32.totalorder %v58_v6, 1  ;;  %vm86_vm9 = vcmp.eq.s32.totalorder %v58_v6, 2 }
  0x40   :  { %v131_v16 = vsel %vm121_vm4, %v348_v10, %v113_v5  ;;  %196 = vst.msk [vmem:[#allocation7 + $0x10] sm:$0xf] %vm344_vm1, %v184_v13  ;;  %v78_v18 = vsel %vm68_vm5, %v338_v3, %v336_v2  ;;  %vm104_vm10 = vcmp.eq.s32.totalorder %v58_v6, 3  ;;  %vm122_vm12 = vcmp.eq.s32.totalorder %v58_v6, 4 }
  0x41   :  { %v149_v17 = vsel %vm139_vm2, %v350_v11, %v131_v16  ;;  %v96_v20 = vsel %vm86_vm9, %v340_v7, %v78_v18  ;;  %vm140_vm6 = vcmp.eq.s32.totalorder %v58_v6, 5  ;;  %vm158_vm13 = vcmp.eq.s32.totalorder %v58_v6, 6 }
  0x42   :  { %v167_v19 = vsel %vm157_vm8, %v352_v14, %v149_v17  ;;  %v114_v22 = vsel %vm104_vm10, %v342_v8, %v96_v20  ;;  %vm176_vm14 = vcmp.eq.s32.totalorder %v58_v6, 7  ;;  %v59_v23 = vsel %vm43_vm7, %v51_v12, %v35_v47 }
  0x43   :  { %v185_v21 = vsel %vm175_vm3, %v354_v15, %v167_v19  ;;  %v132_v24 = vsel %vm122_vm12, %v348_v10, %v114_v22  ;;  %vm69_vm15 = vcmp.eq.s32.totalorder %v59_v23, 1  ;;  %vm87_vm0 = vcmp.eq.s32.totalorder %v59_v23, 2 }
  0x44   :  { %197 = vst.msk [vmem:[#allocation7 + $0x14] sm:$0xf] %vm344_vm1, %v185_v21  ;;  %vm105_vm11 = vcmp.eq.s32.totalorder %v59_v23, 3  ;;  %v150_v25 = vsel %vm140_vm6, %v350_v11, %v132_v24  ;;  %v79_v26 = vsel %vm69_vm15, %v338_v3, %v336_v2  ;;  %vm123_vm4 = vcmp.eq.s32.totalorder %v59_v23, 4 }
  0x45   :  { %v168_v27 = vsel %vm158_vm13, %v352_v14, %v150_v25  ;;  %v97_v28 = vsel %vm87_vm0, %v340_v7, %v79_v26  ;;  %vm141_vm2 = vcmp.eq.s32.totalorder %v59_v23, 5  ;;  %vm159_vm7 = vcmp.eq.s32.totalorder %v59_v23, 6 }
  0x46   :  { %v186_v29 = vsel %vm176_vm14, %v354_v15, %v168_v27  ;;  %v115_v30 = vsel %vm105_vm11, %v342_v8, %v97_v28  ;;  %vm177_vm8 = vcmp.eq.s32.totalorder %v59_v23, 7 }
  0x47   :  { %198 = vst.msk [vmem:[#allocation7 + $0x18] sm:$0xf] %vm344_vm1, %v186_v29  ;;  %v133_v31 = vsel %vm123_vm4, %v348_v10, %v115_v30 }
  0x48   :  { %v151_v32 = vsel %vm141_vm2, %v350_v11, %v133_v31 }
  0x49   :  { %v169_v2 = vsel %vm159_vm7, %v352_v14, %v151_v32 }
  0x4a   :  { %v187_v3 = vsel %vm177_vm8, %v354_v15, %v169_v2 }
  0x4b   :  { %199 = vst.msk [vmem:[#allocation7 + $0x1c] sm:$0xf] %vm344_vm1, %v187_v3 }
  0x4c   :  { %204 = vsyncadd [#allocation6], 448  ;;  %s293_s1 = smov [#allocation7]  }
  0x4d   :  { %s205_s13 = sshll.u32 %s293_s1, 4  ;;  %s206_s13 = int_to_ptr.vmem [resolvable:$true] %s205_s13 }
  0x4e   :  { %s261_s14 = scalar_lea.vmem %s206_s13, 64  ;;  %s265_s15 = scalar_lea.vmem %s206_s13, 512 }
  0x4f   :  { %p262_p11 = scmp.ne.s32.totalorder %s206_s13, %s261_s14  ;;  %p266_p12 = scmp.lt.s32.totalorder %s206_s13, %s206_s13 }
  0x50   :  { %p267_p13 = scmp.lt.s32.totalorder %s265_s15, %s261_s14 }
  0x52   :  { %p268_p0 = por %p267_p13, %p266_p12 }
  0x54   :  { %p269_p1 = pnand %p268_p0, %p262_p11 }
  0x56   :  { %272 = shalt.err (!%p269_p1)
}
  0x57   :  { %s273_s18 = scalar_lea.hbm %s469_s2, 64 }
  0x58   :  { %p274_p2 = scmp.ne.s32.totalorder %s469_s2, %s273_s18  ;;  %p277_p3 = scmp.lt.u32.totalorder %s273_s18, %s469_s2 }
  0x5a   :  { %p279_p4 = pnand %p277_p3, %p274_p2 }
  0x5c   :  { %282 = shalt.err (!%p279_p4)
}
  0x5d   :  { %211 = dma.vmem_to_hbm [thread:$0]  %s206_s13, 64, %s469_s2, [#allocation6], %s291_s29, %s291_s29, %s292_s30  }
  0x5e   :  { %287 = dma.done.wait [#allocation6], 512  }
  0x5f   :  { %288 = vsyncadd [#allocation6], 4294966784 }
  0x60   :  { %215 = vsyncpa [#allocation5], 1 }
  0x61   :  { %216 = vsyncpa [#allocation6], 1 }

</bundles_post_ra>
